<compile_context>
chip_gen: v7x
topology: tpu7x:2x2x1
jax: 0.10.0
libtpu: 0.0.40
codegen_flags: <defaults>
</compile_context>

<pallas_src>
import functools

import jax
import jax.numpy as jnp
from jax import lax
from jax.experimental import pallas as pl
from jax.experimental.pallas import tpu as pltpu


_SUB_MAX = 256  # inner batch sub-chunk (keeps (64, SUB) f32 slabs <= 16 vregs)


def _round_up(n, m):
    return ((n + m - 1) // m) * m


def _pick_tiles(B, block_b):
    """Pick (TB, SUB): grid batch tile and inner sub-chunk, with TB % SUB == 0.

    TB must be a multiple of 128 (lane-dense (num_classes, TB) output blocks)
    or equal to B.  For B > 256 we cap TB so the grid has >= 2 steps, letting
    v7x's two TensorCores both get work (harmless on v5e/v6e).
    """
    if B <= _SUB_MAX and B <= block_b:
        return B, B                                       # single full-batch tile
    tb = min(block_b, _round_up(pl.cdiv(B, 2), 128))      # >= 2 grid steps when B > 256
    tb = max(128, _round_up(tb, 128))                     # 128-aligned lane dim
    sub = _SUB_MAX if tb % _SUB_MAX == 0 else 128
    return tb, sub


def _c2st_kernel(x_ref, w1_ref, b1_ref, w2_ref, b2_ref, w3_ref, b3_ref, o_ref,
                 *, n_sub, sub, compute_dtype):
    """Fused MLP, batch-in-lanes: activations are (features, batch_tile)."""
    f32 = jnp.float32
    # Weights / biases are tiny and VMEM-resident (constant index_maps); read once.
    w1 = w1_ref[...]          # (H1, x_in)   compute_dtype
    w2 = w2_ref[...]          # (H2, H1)
    w3 = w3_ref[...]          # (nc, H2)
    b1 = b1_ref[...]          # (H1, 1)      f32
    b2 = b2_ref[...]          # (H2, 1)
    b3 = b3_ref[...]          # (nc, 1)

    nt = (((1,), (1,)), ((), ()))   # contract last dims: A @ B^T (flash-attn NT form)

    def mlp_cols(xs):
        # xs: (rows, x_in) slab of batch rows.  All MXU outputs have the batch
        # on the lane axis -> full-width MXU passes, lane-dense ReLU/bias/store.
        xb = xs.astype(compute_dtype)                                    # in-kernel cast
        h1 = lax.dot_general(w1, xb, nt, preferred_element_type=f32)     # (H1, rows)
        h1 = jnp.maximum(h1 + b1, 0.0).astype(compute_dtype)
        h2 = jnp.dot(w2, h1, preferred_element_type=f32)                 # (H2, rows)
        h2 = jnp.maximum(h2 + b2, 0.0).astype(compute_dtype)
        return jnp.dot(w3, h2, preferred_element_type=f32) + b3          # (nc, rows)

    if n_sub == 1:
        o_ref[...] = mlp_cols(x_ref[...]).astype(o_ref.dtype)
    else:
        # Statically-unrolled sub-chunk loop over the batch tile: bounds per-chunk
        # f32 activation slabs to <= 16 vregs (no spills; v5e has 1 vst slot).
        # n_sub is a small static int; starts are static, 128-aligned slices.
        for s in range(n_sub):
            start = s * sub
            xs = x_ref[pl.ds(start, sub), :]
            o_ref[:, pl.ds(start, sub)] = mlp_cols(xs).astype(o_ref.dtype)


@functools.partial(jax.jit, static_argnames=("block_b", "compute_dtype"))
def classifier_c2st_forward(x, w1, b1, w2, b2, w3, b3, block_b=1024,
                            compute_dtype=jnp.bfloat16):
    """classifierC2ST forward.

    x: (B, x_in) (f32 or bf16).  Weights in PyTorch layout w_i: (out_i, in_i),
    biases b_i: (out_i,).  Returns (B, num_classes) f32 logits.
    """
    B, x_in = x.shape
    H1, H2, num_classes = w1.shape[0], w2.shape[0], w3.shape[0]

    TB, SUB = _pick_tiles(B, block_b)
    n_sub = TB // SUB
    nb = pl.cdiv(B, TB)          # ragged tail handled by Pallas (no jnp.pad pass over x)

    # Weights to the matmul dtype (tiny O(H^2) one-off); x itself is NOT cast in
    # the wrapper -- it is streamed as-is and cast on the VPU inside the kernel.
    w1c = w1.astype(compute_dtype)
    w2c = w2.astype(compute_dtype)
    w3c = w3.astype(compute_dtype)
    # Biases as f32 columns so they broadcast over the lane (batch) axis.
    b1c = b1.reshape(H1, 1).astype(jnp.float32)
    b2c = b2.reshape(H2, 1).astype(jnp.float32)
    b3c = b3.reshape(num_classes, 1).astype(jnp.float32)

    flops = 2 * B * (x_in * H1 + H1 * H2 + H2 * num_classes)
    w_itemsize = jnp.dtype(compute_dtype).itemsize
    bytes_accessed = int(
        x.size * x.dtype.itemsize
        + (w1c.size + w2c.size + w3c.size) * w_itemsize
        + (b1c.size + b2c.size + b3c.size) * 4
        + num_classes * B * 4
    )

    kernel = functools.partial(_c2st_kernel, n_sub=n_sub, sub=SUB,
                               compute_dtype=compute_dtype)

    out_t = pl.pallas_call(
        kernel,
        out_shape=jax.ShapeDtypeStruct((num_classes, B), jnp.float32),
        grid=(nb,),
        in_specs=[
            pl.BlockSpec((TB, x_in), lambda i: (i, 0)),             # streamed batch tile
            pl.BlockSpec((H1, x_in), lambda i: (0, 0)),             # weight-stationary
            pl.BlockSpec((H1, 1), lambda i: (0, 0)),
            pl.BlockSpec((H2, H1), lambda i: (0, 0)),
            pl.BlockSpec((H2, 1), lambda i: (0, 0)),
            pl.BlockSpec((num_classes, H2), lambda i: (0, 0)),
            pl.BlockSpec((num_classes, 1), lambda i: (0, 0)),
        ],
        out_specs=pl.BlockSpec((num_classes, TB), lambda i: (0, i)),  # lane-dense logits
        compiler_params=pltpu.CompilerParams(
            dimension_semantics=("parallel",),
        ),
        cost_estimate=pl.CostEstimate(
            flops=flops, transcendentals=0, bytes_accessed=bytes_accessed
        ),
    )(x, w1c, b1c, w2c, b2c, w3c, b3c)

    # (num_classes, B) -> PyTorch-facing (B, num_classes); 8 B/row, negligible.
    return out_t.T


def _init_linear(key, fan_in, fan_out):
    """PyTorch default init U(-1/sqrt(fan_in), 1/sqrt(fan_in)); (out, in) layout."""
    kw, kb = jax.random.split(key)
    bound = 1.0 / jnp.sqrt(jnp.float32(fan_in))
    w = jax.random.uniform(kw, (fan_out, fan_in), jnp.float32, -bound, bound)
    b = jax.random.uniform(kb, (fan_out,), jnp.float32, -bound, bound)
    return w, b


def _reference_forward_f32(x, w1, b1, w2, b2, w3, b3):
    h1 = jnp.maximum(x @ w1.T + b1, 0.0)
    h2 = jnp.maximum(h1 @ w2.T + b2, 0.0)
    return h2 @ w3.T + b3


def _reference_forward_bf16(x, w1, b1, w2, b2, w3, b3):
    """Same bf16-in / f32-acc cast pattern as the kernel (row-major orientation)."""
    f32, bf16 = jnp.float32, jnp.bfloat16
    nt = (((1,), (1,)), ((), ()))
    h1 = lax.dot_general(x.astype(bf16), w1.astype(bf16), nt,
                         preferred_element_type=f32) + b1
    h1 = jnp.maximum(h1, 0.0).astype(bf16)
    h2 = lax.dot_general(h1, w2.astype(bf16), nt, preferred_element_type=f32) + b2
    h2 = jnp.maximum(h2, 0.0).astype(bf16)
    return lax.dot_general(h2, w3.astype(bf16), nt, preferred_element_type=f32) + b3


if __name__ == "__main__":
    # Small shapes consistent with the module: x_in=32, H=64, num_classes=2.
    B, X_IN, H, NUM_CLASSES = 8, 32, 64, 2

    root = jax.random.PRNGKey(0)
    kx, k1, k2, k3, kx2, kx3 = jax.random.split(root, 6)

    x = jax.random.normal(kx, (B, X_IN), jnp.float32)
    w1, b1 = _init_linear(k1, X_IN, H)
    w2, b2 = _init_linear(k2, H, H)
    w3, b3 = _init_linear(k3, H, NUM_CLASSES)

    out = jax.block_until_ready(classifier_c2st_forward(x, w1, b1, w2, b2, w3, b3))
    assert out.shape == (B, NUM_CLASSES), out.shape
    ref_bf16 = _reference_forward_bf16(x, w1, b1, w2, b2, w3, b3)
    ref_f32 = _reference_forward_f32(x, w1, b1, w2, b2, w3, b3)
    assert jnp.allclose(out, ref_bf16, atol=2e-3, rtol=2e-3), "mismatch vs bf16 reference"
    assert jnp.allclose(out, ref_f32, atol=5e-2, rtol=5e-2), "mismatch vs f32 reference"

    # Multi-block batch grid + ragged tail (no wrapper-side padding).
    B2 = 300
    x2 = jax.random.normal(kx2, (B2, X_IN), jnp.float32)
    out2 = jax.block_until_ready(
        classifier_c2st_forward(x2, w1, b1, w2, b2, w3, b3, block_b=128))
    assert out2.shape == (B2, NUM_CLASSES), out2.shape
    assert jnp.allclose(out2, _reference_forward_bf16(x2, w1, b1, w2, b2, w3, b3),
                        atol=2e-3, rtol=2e-3), "mismatch on tiled batch"

    # Large-tile path: inner sub-chunk loop (TB > SUB), 2 grid steps, ragged tail.
    B3 = 700
    x3 = jax.random.normal(kx3, (B3, X_IN), jnp.float32)
    out3 = jax.block_until_ready(classifier_c2st_forward(x3, w1, b1, w2, b2, w3, b3))
    assert out3.shape == (B3, NUM_CLASSES), out3.shape
    assert jnp.allclose(out3, _reference_forward_bf16(x3, w1, b1, w2, b2, w3, b3),
                        atol=2e-3, rtol=2e-3), "mismatch on sub-chunked batch"

    # Optional f32 MXU path (closer to the f32 PyTorch module numerics).
    out_f32 = jax.block_until_ready(
        classifier_c2st_forward(x, w1, b1, w2, b2, w3, b3, compute_dtype=jnp.float32))
    assert jnp.allclose(out_f32, ref_f32, atol=1e-2, rtol=1e-2), "mismatch on f32 path"

    print("KERNEL_OK")
</pallas_src>

<mosaic_0001>
module attributes {stable_mosaic.version = 11 : i64} {
  func.func @_c2st_kernel(%arg0: i32, %arg1: memref<8x32xf32, #tpu.memory_space<vmem>>, %arg2: memref<64x32xbf16, #tpu.memory_space<vmem>>, %arg3: memref<64x1xf32, #tpu.memory_space<vmem>>, %arg4: memref<64x64xbf16, #tpu.memory_space<vmem>>, %arg5: memref<64x1xf32, #tpu.memory_space<vmem>>, %arg6: memref<2x64xbf16, #tpu.memory_space<vmem>>, %arg7: memref<2x1xf32, #tpu.memory_space<vmem>>, %arg8: memref<2x8xf32, #tpu.memory_space<vmem>>) attributes {dimension_semantics = [#tpu.dimension_semantics<parallel>], iteration_bounds = array<i64: 1>, scalar_prefetch = 0 : i64, scratch_operands = 0 : i64, tpu.core_type = #tpu.core_type<tc>, window_params = [{transform_indices = @transform_0, window_bounds = array<i64: 8, 32>}, {pipeline_mode = #tpu.pipeline_mode<synchronous>, transform_indices = @transform_1, window_bounds = array<i64: 64, 32>}, {pipeline_mode = #tpu.pipeline_mode<synchronous>, transform_indices = @transform_2, window_bounds = array<i64: 64, 1>}, {pipeline_mode = #tpu.pipeline_mode<synchronous>, transform_indices = @transform_3, window_bounds = array<i64: 64, 64>}, {pipeline_mode = #tpu.pipeline_mode<synchronous>, transform_indices = @transform_4, window_bounds = array<i64: 64, 1>}, {pipeline_mode = #tpu.pipeline_mode<synchronous>, transform_indices = @transform_5, window_bounds = array<i64: 2, 64>}, {pipeline_mode = #tpu.pipeline_mode<synchronous>, transform_indices = @transform_6, window_bounds = array<i64: 2, 1>}, {transform_indices = @transform_7, window_bounds = array<i64: 2, 8>}]} {
    %c0 = arith.constant 0 : index
    %c0_0 = arith.constant 0 : index
    %0 = vector.load %arg2[%c0, %c0_0] : memref<64x32xbf16, #tpu.memory_space<vmem>>, vector<64x32xbf16>
    %c0_1 = arith.constant 0 : index
    %c0_2 = arith.constant 0 : index
    %1 = vector.load %arg4[%c0_1, %c0_2] : memref<64x64xbf16, #tpu.memory_space<vmem>>, vector<64x64xbf16>
    %c0_3 = arith.constant 0 : index
    %c0_4 = arith.constant 0 : index
    %2 = vector.load %arg6[%c0_3, %c0_4] : memref<2x64xbf16, #tpu.memory_space<vmem>>, vector<2x64xbf16>
    %c0_5 = arith.constant 0 : index
    %c0_6 = arith.constant 0 : index
    %3 = vector.load %arg3[%c0_5, %c0_6] : memref<64x1xf32, #tpu.memory_space<vmem>>, vector<64x1xf32>
    %c0_7 = arith.constant 0 : index
    %c0_8 = arith.constant 0 : index
    %4 = vector.load %arg5[%c0_7, %c0_8] : memref<64x1xf32, #tpu.memory_space<vmem>>, vector<64x1xf32>
    %c0_9 = arith.constant 0 : index
    %c0_10 = arith.constant 0 : index
    %5 = vector.load %arg7[%c0_9, %c0_10] : memref<2x1xf32, #tpu.memory_space<vmem>>, vector<2x1xf32>
    %c0_11 = arith.constant 0 : index
    %c0_12 = arith.constant 0 : index
    %6 = vector.load %arg1[%c0_11, %c0_12] : memref<8x32xf32, #tpu.memory_space<vmem>>, vector<8x32xf32>
    %7 = arith.truncf %6 : vector<8x32xf32> to vector<8x32xbf16>
    %cst = arith.constant dense<0.000000e+00> : vector<64x8xf32>
    %8 = tpu.matmul %0, %7, %cst {dimension_numbers = #tpu.dot_dimension_numbers<[1], [1], [0], [0], [0, 0, 1, 0], [], []>} : vector<64x32xbf16>, vector<8x32xbf16>, vector<64x8xf32> -> vector<64x8xf32>
    %9 = vector.broadcast %3 : vector<64x1xf32> to vector<64x8xf32>
    %10 = arith.addf %8, %9 : vector<64x8xf32>
    %cst_13 = arith.constant 0.000000e+00 : f32
    %11 = vector.broadcast %cst_13 : f32 to vector<64x8xf32>
    %12 = arith.maximumf %10, %11 : vector<64x8xf32>
    %13 = arith.truncf %12 : vector<64x8xf32> to vector<64x8xbf16>
    %cst_14 = arith.constant dense<0.000000e+00> : vector<64x8xf32>
    %14 = tpu.matmul %1, %13, %cst_14 {dimension_numbers = #tpu.dot_dimension_numbers<[1], [0], [0], [1], [0, 0, 1, 1], [], []>} : vector<64x64xbf16>, vector<64x8xbf16>, vector<64x8xf32> -> vector<64x8xf32>
    %15 = vector.broadcast %4 : vector<64x1xf32> to vector<64x8xf32>
    %16 = arith.addf %14, %15 : vector<64x8xf32>
    %cst_15 = arith.constant 0.000000e+00 : f32
    %17 = vector.broadcast %cst_15 : f32 to vector<64x8xf32>
    %18 = arith.maximumf %16, %17 : vector<64x8xf32>
    %19 = arith.truncf %18 : vector<64x8xf32> to vector<64x8xbf16>
    %cst_16 = arith.constant dense<0.000000e+00> : vector<2x8xf32>
    %20 = tpu.matmul %2, %19, %cst_16 {dimension_numbers = #tpu.dot_dimension_numbers<[1], [0], [0], [1], [0, 0, 1, 1], [], []>} : vector<2x64xbf16>, vector<64x8xbf16>, vector<2x8xf32> -> vector<2x8xf32>
    %21 = vector.broadcast %5 : vector<2x1xf32> to vector<2x8xf32>
    %22 = arith.addf %20, %21 : vector<2x8xf32>
    %c0_17 = arith.constant 0 : index
    %c0_18 = arith.constant 0 : index
    %23 = vector.load %arg8[%c0_17, %c0_18] : memref<2x8xf32, #tpu.memory_space<vmem>>, vector<2x8xf32>
    tpu.vector_store %arg8[%c0_17, %c0_18], %22 {strides = array<i32>} : memref<2x8xf32, #tpu.memory_space<vmem>>, vector<2x8xf32>,
    return
  }
  func.func @transform_0(%arg0: i32) -> (i32, i32) {
    %c0_i32 = arith.constant 0 : i32
    %c0_i32_0 = arith.constant 0 : i32
    return %arg0, %c0_i32 : i32, i32
  }
  func.func @transform_1(%arg0: i32) -> (i32, i32) {
    %c0_i32 = arith.constant 0 : i32
    %c0_i32_0 = arith.constant 0 : i32
    %c0_i32_1 = arith.constant 0 : i32
    return %c0_i32, %c0_i32_0 : i32, i32
  }
  func.func @transform_2(%arg0: i32) -> (i32, i32) {
    %c0_i32 = arith.constant 0 : i32
    %c0_i32_0 = arith.constant 0 : i32
    %c0_i32_1 = arith.constant 0 : i32
    return %c0_i32, %c0_i32_0 : i32, i32
  }
  func.func @transform_3(%arg0: i32) -> (i32, i32) {
    %c0_i32 = arith.constant 0 : i32
    %c0_i32_0 = arith.constant 0 : i32
    %c0_i32_1 = arith.constant 0 : i32
    return %c0_i32, %c0_i32_0 : i32, i32
  }
  func.func @transform_4(%arg0: i32) -> (i32, i32) {
    %c0_i32 = arith.constant 0 : i32
    %c0_i32_0 = arith.constant 0 : i32
    %c0_i32_1 = arith.constant 0 : i32
    return %c0_i32, %c0_i32_0 : i32, i32
  }
  func.func @transform_5(%arg0: i32) -> (i32, i32) {
    %c0_i32 = arith.constant 0 : i32
    %c0_i32_0 = arith.constant 0 : i32
    %c0_i32_1 = arith.constant 0 : i32
    return %c0_i32, %c0_i32_0 : i32, i32
  }
  func.func @transform_6(%arg0: i32) -> (i32, i32) {
    %c0_i32 = arith.constant 0 : i32
    %c0_i32_0 = arith.constant 0 : i32
    %c0_i32_1 = arith.constant 0 : i32
    return %c0_i32, %c0_i32_0 : i32, i32
  }
  func.func @transform_7(%arg0: i32) -> (i32, i32) {
    %c0_i32 = arith.constant 0 : i32
    %c0_i32_0 = arith.constant 0 : i32
    return %c0_i32, %arg0 : i32, i32
  }
}

</mosaic_0001>

<bundles_post_ra>
// kernel: classifier_c2st_forward.1
= control target key start
LH: loop header
LB: loop body
LE: loop exit
PB: predicated region body
PF: predicated region fallthrough
CT: control target
= control target key end

     0   :  { %vm124_vm0 = vcmask 261120   ;;  %v543_v3 = vmov 0   ;;  %s691_s0 = inlined_call_operand.vmem [shape: f32[8,32], index: 0, kind: input, shape index: {}]   ;;  %s692_s1 = inlined_call_operand.vmem [shape: bf16[64,32], index: 1, kind: input, shape index: {}]   ;;  %s693_s2 = inlined_call_operand.vmem [shape: f32[64,1], index: 2, kind: input, shape index: {}]   ;;  %s694_s3 = inlined_call_operand.vmem [shape: bf16[64,64], index: 3, kind: input, shape index: {}]   ;;  %s695_s4 = inlined_call_operand.vmem [shape: f32[64,1], index: 4, kind: input, shape index: {}]   ;;  %s696_s5 = inlined_call_operand.vmem [shape: bf16[2,64], index: 5, kind: input, shape index: {}]   ;;  %s697_s6 = inlined_call_operand.vmem [shape: f32[2,1], index: 6, kind: input, shape index: {}]   ;;  %s698_s7 = inlined_call_operand.hbm [shape: f32[2,8], index: 7, kind: output, shape index: {}]  }
   0x1   :  { %v62_v0 = vld [vmem:[%s691_s0] sm:$0xff]  ;;  %509 = vset.pattern.permute.xlu0 %v543_v3  ;;  %510 = vset.pattern.permute.xlu1 %v543_v3  ;;  %v47_v6 = vld [vmem:[%s693_s2 + $0x10] sm:$0xff]  ;;  %v46_v7 = vld [vmem:[%s693_s2 + $0x8] sm:$0xff] }
   0x2   :  { %v63_v1 = vpack.c.bf16 %v62_v0, %v62_v0  ;;  %v511_v2 = vld [vmem:[%s692_s1] sm:$0xff]   ;;  %76 = vperm.xlu1 %510, %v47_v6   ;;  %v512_v8 = vld [vmem:[%s692_s1 + $0x8] sm:$0xff]   ;;  %v48_v9 = vld [vmem:[%s693_s2 + $0x18] sm:$0xff] }
   0x3   :  { %468 = vmatprep.mubr.msk.bf16.mxu0 %vm124_vm0, %v511_v2  ;;  %v45_v5 = vld [vmem:[%s693_s2] sm:$0xff]  ;;  %v513_v10 = vld [vmem:[%s692_s1 + $0x10] sm:$0xff]   ;;  %v50_v12 = vld [vmem:[%s693_s2 + $0x28] sm:$0xff] }
   0x4   :  { %504 = vmatprep.subr.msk.bf16.mxu0 %vm124_vm0, %v63_v1  ;;  %v138_v4 = vsel %vm124_vm0, %v63_v1, 0  ;;  %66 = vperm.xlu0 %509, %v45_v5   ;;  %v49_v11 = vld [vmem:[%s693_s2 + $0x20] sm:$0xff] }
   0x5   :  { %467 = vmatpush3.bf16.xpose.msra.mxu0 %v138_v4 }
   0x6   :  { %81 = vperm.xlu1 %510, %v48_v9  }
   0x8   :  { %71 = vperm.xlu0 %509, %v46_v7  }
   0xc   :  { %469 = vmatmul.mubr.msk.bf16.vlgmr.msra.gmra.mrb[0].mxu0 %vm124_vm0, %v512_v8 }
   0xd   :  { %472 = vmatprep.mubr.msk.bf16.mxu0 %vm124_vm0, %v513_v10 }
   0xe   :  { %12 = vsyncpa [#allocation3], 0  ;;  %86 = vperm.xlu0 %509, %v49_v11   ;;  %v51_v13 = vld [vmem:[%s693_s2 + $0x30] sm:$0xff]  ;;  %91 = vperm.xlu1 %510, %v50_v12   ;;  %v514_v14 = vld [vmem:[%s692_s1 + $0x18] sm:$0xff]   ;;  %vm277_vm1 = vcmask 523264   ;;  %v544_v1 = vmov 0.0  }
   0xf   :  { %v52_v15 = vld [vmem:[%s693_s2 + $0x38] sm:$0xff]  ;;  %v53_v16 = vld [vmem:[%s695_s4] sm:$0xff]  ;;  %v54_v17 = vld [vmem:[%s695_s4 + $0x8] sm:$0xff]  ;;  %492 = vmatprep.subr.bf16.mxu0 %v544_v1  ;;  %vm545_vm2 = vmmov 0   ;;  %s546_s25 = smov [#allocation2]   ;;  %vm415_vm3 = vcmask 58368  }
  0x10   :  { %v55_v18 = vld [vmem:[%s695_s4 + $0x10] sm:$0xff]  ;;  %v56_v19 = vld [vmem:[%s695_s4 + $0x18] sm:$0xff]  ;;  %v57_v20 = vld [vmem:[%s695_s4 + $0x20] sm:$0xff]  ;;  %s423_s26 = sshll.u32 %s546_s25, 4  ;;  %s424_s26 = int_to_ptr.vmem [resolvable:$true] %s423_s26 }
  0x11   :  { %v58_v21 = vld [vmem:[%s695_s4 + $0x28] sm:$0xff]  ;;  %v59_v22 = vld [vmem:[%s695_s4 + $0x30] sm:$0xff]  ;;  %v60_v23 = vld [vmem:[%s695_s4 + $0x38] sm:$0xff]  ;;  %s519_s27 = scalar_lea.vmem %s424_s26, 32  ;;  %p524_p1 = scmp.lt.s32.totalorder %s424_s26, %s424_s26 }
  0x12   :  { %96 = vperm.xlu0 %509, %v51_v13   ;;  %101 = vperm.xlu1 %510, %v52_v15   ;;  %v61_v24 = vld [vmem:[%s697_s6] sm:$0x3]  ;;  %v516_v62 = vld [vmem:[%s694_s3 + $0x8] sm:$0xff]   ;;  %v517_v63 = vld [vmem:[%s694_s3 + $0x10] sm:$0xff]   ;;  %p520_p0 = scmp.ne.s32.totalorder %s424_s26, %s519_s27  ;;  %p525_p2 = scmp.lt.s32.totalorder %s519_s27, %s519_s27 }
  0x13   :  { %v515_v25 = vld [vmem:[%s694_s3] sm:$0xff]   ;;  %v518_v0 = vld [vmem:[%s694_s3 + $0x18] sm:$0xff]  }
  0x14   :  { %473 = vmatmul.mubr.msk.bf16.gmra.mrb[4].mxu0 %vm124_vm0, %v514_v14  ;;  %484 = vmatprep.mubr.msk.bf16.mxu1 %vm277_vm1, %v515_v25  ;;  %p526_p3 = por %p525_p2, %p524_p1 }
  0x15   :  { %500 = vmatprep.mubr.msk.bf16.mxu0 %vm545_vm2, %v544_v1 }
  0x16   :  { %219 = vperm.xlu0 %509, %v53_v16   ;;  %224 = vperm.xlu1 %510, %v54_v17   ;;  %p527_p4 = pnand %p526_p3, %p520_p0 }
  0x1a   :  { %229 = vperm.xlu0 %509, %v55_v18   ;;  %234 = vperm.xlu1 %510, %v56_v19  }
  0x1e   :  { %239 = vperm.xlu0 %509, %v57_v20   ;;  %244 = vperm.xlu1 %510, %v58_v21  }
  0x22   :  { %249 = vperm.xlu0 %509, %v59_v22   ;;  %254 = vperm.xlu1 %510, %v60_v23  }
  0x26   :  { %369 = vperm.xlu0 %509, %v61_v24  }
  0x81   :  { %v77_v27 = vpop.permute.xlu1 %76 }
  0x83   :  { %v67_v26 = vpop.permute.xlu0 %66 }
  0x85   :  { %v82_v29 = vpop.permute.xlu1 %81 }
  0x87   :  { %v72_v28 = vpop.permute.xlu0 %71 }
  0x8d   :  { %v87_v33 = vpop.permute.xlu0 %86  ;;  %v92_v38 = vpop.permute.xlu1 %91 }
  0x91   :  { %v97_v45 = vpop.permute.xlu0 %96  ;;  %v102_v50 = vpop.permute.xlu1 %101 }
  0x95   :  { %v220_v2 = vpop.permute.xlu0 %219  ;;  %v225_v3 = vpop.permute.xlu1 %224 }
  0x99   :  { %v230_v4 = vpop.permute.xlu0 %229  ;;  %v235_v5 = vpop.permute.xlu1 %234 }
  0x9d   :  { %v240_v9 = vpop.permute.xlu0 %239  ;;  %v245_v14 = vpop.permute.xlu1 %244 }
  0xa1   :  { %v250_v21 = vpop.permute.xlu0 %249 }
  0xdf   :  { %v470_v30 = vpop.f32.mrb[0].mxu0 }
  0xe0   :  { %v183_v31 = vadd.f32 %v470_v30, %v77_v27  ;;  %v174_v32 = vpop.f32.mrb[1].mxu0 }
  0xe1   :  { %v175_v34 = vadd.f32 %v174_v32, %v67_v26  ;;  %v471_v35 = vpop.f32.mrb[2].mxu0  ;;  %v255_v26 = vpop.permute.xlu1 %254 }
  0xe2   :  { %v186_v36 = vadd.f32 %v471_v35, %v82_v29  ;;  %v177_v37 = vpop.f32.mrb[3].mxu0  ;;  %v207_v40 = vmax.f32 %v183_v31, 0.0 }
  0xe3   :  { %v178_v39 = vadd.f32 %v177_v37, %v72_v28  ;;  %v205_v42 = vmax.f32 %v175_v34, 0.0 }
  0xe4   :  { %v208_v41 = vmax.f32 %v186_v36, 0.0 }
  0xe5   :  { %v206_v43 = vmax.f32 %v178_v39, 0.0  ;;  %v370_v39 = vpop.permute.xlu0 %369 }
  0xe6   :  { %v214_v44 = vpack.c.bf16 %v208_v41, %v207_v40 }
  0xe7   :  { %v474_v46 = vpop.f32.mrb[4].mxu0  ;;  %v213_v47 = vpack.c.bf16 %v206_v43, %v205_v42 }
  0xe8   :  { %v199_v48 = vadd.f32 %v474_v46, %v97_v45  ;;  %v190_v49 = vpop.f32.mrb[5].mxu0 }
  0xe9   :  { %v191_v51 = vadd.f32 %v190_v49, %v87_v33  ;;  %v475_v52 = vpop.f32.mrb[6].mxu0  ;;  %476 = vmatprep.subr.bf16.mxu1 %v213_v47 }
  0xea   :  { %v202_v53 = vadd.f32 %v475_v52, %v102_v50  ;;  %v193_v54 = vpop.f32.mrb[7].mxu0  ;;  %477 = vmatpush3.bf16.msra.mxu1 %v213_v47  ;;  %v211_v56 = vmax.f32 %v199_v48, 0.0 }
  0xeb   :  { %v194_v55 = vadd.f32 %v193_v54, %v92_v38  ;;  %478 = vmatprep.subr.bf16.mxu1 %v214_v44  ;;  %v209_v58 = vmax.f32 %v191_v51, 0.0  ;;  %v44_v38 = vld [vmem:[%s696_s5] sm:$0x1] }
  0xec   :  { %v212_v57 = vmax.f32 %v202_v53, 0.0 }
  0xed   :  { %v210_v59 = vmax.f32 %v194_v55, 0.0 }
  0xee   :  { %v216_v60 = vpack.c.bf16 %v212_v57, %v211_v56  ;;  %479 = vmatpush3.bf16.msra.mxu1 %v214_v44 }
  0xef   :  { %v215_v61 = vpack.c.bf16 %v210_v59, %v209_v58 }
  0xf1   :  { %480 = vmatprep.subr.bf16.mxu1 %v215_v61 }
  0xf2   :  { %481 = vmatpush3.bf16.msra.mxu1 %v215_v61 }
  0xf3   :  { %482 = vmatprep.subr.bf16.mxu1 %v216_v60 }
  0xf6   :  { %483 = vmatpush3.bf16.msra.mxu1 %v216_v60 }
  0xf9   :  { %485 = vmatmul.mubr.msk.bf16.vlgmr.msra.gmra.mrb[0].mxu1 %vm277_vm1, %v516_v62 }
  0xfa   :  { %488 = vmatprep.mubr.msk.bf16.mxu1 %vm277_vm1, %v517_v63 }
 0x101   :  { %489 = vmatmul.mubr.msk.bf16.gmra.mrb[4].mxu1 %vm277_vm1, %v518_v0 }
 0x1cc   :  { %v486_v6 = vpop.f32.mrb[0].mxu1 }
 0x1cd   :  { %v333_v7 = vadd.f32 %v486_v6, %v230_v4  ;;  %v324_v8 = vpop.f32.mrb[1].mxu1 }
 0x1ce   :  { %v325_v10 = vadd.f32 %v324_v8, %v220_v2  ;;  %v487_v11 = vpop.f32.mrb[2].mxu1 }
 0x1cf   :  { %v336_v12 = vadd.f32 %v487_v11, %v235_v5  ;;  %v327_v13 = vpop.f32.mrb[3].mxu1  ;;  %v357_v16 = vmax.f32 %v333_v7, 0.0 }
 0x1d0   :  { %v328_v15 = vadd.f32 %v327_v13, %v225_v3  ;;  %v355_v18 = vmax.f32 %v325_v10, 0.0 }
 0x1d1   :  { %v358_v17 = vmax.f32 %v336_v12, 0.0 }
 0x1d2   :  { %v356_v19 = vmax.f32 %v328_v15, 0.0 }
 0x1d3   :  { %v364_v20 = vpack.c.bf16 %v358_v17, %v357_v16 }
 0x1d4   :  { %v363_v22 = vpack.c.bf16 %v356_v19, %v355_v18  ;;  %v490_v23 = vpop.f32.mrb[4].mxu1 }
 0x1d5   :  { %v349_v24 = vadd.f32 %v490_v23, %v250_v21  ;;  %v340_v25 = vpop.f32.mrb[5].mxu1 }
 0x1d6   :  { %v341_v27 = vadd.f32 %v340_v25, %v240_v9  ;;  %v491_v28 = vpop.f32.mrb[6].mxu1  ;;  %493 = vmatpush3.bf16.msra.mxu0 %v363_v22 }
 0x1d7   :  { %v352_v29 = vadd.f32 %v491_v28, %v255_v26  ;;  %v343_v30 = vpop.f32.mrb[7].mxu1  ;;  %494 = vmatprep.subr.bf16.mxu0 %v544_v1  ;;  %v361_v32 = vmax.f32 %v349_v24, 0.0 }
 0x1d8   :  { %v344_v31 = vadd.f32 %v343_v30, %v245_v14  ;;  %v359_v34 = vmax.f32 %v341_v27, 0.0 }
 0x1d9   :  { %v362_v33 = vmax.f32 %v352_v29, 0.0 }
 0x1da   :  { %v360_v35 = vmax.f32 %v344_v31, 0.0  ;;  %495 = vmatpush3.bf16.msra.mxu0 %v364_v20 }
 0x1db   :  { %v366_v36 = vpack.c.bf16 %v362_v33, %v361_v32  ;;  %496 = vmatprep.subr.bf16.mxu0 %v544_v1 }
 0x1dc   :  { %v365_v37 = vpack.c.bf16 %v360_v35, %v359_v34 }
 0x1de   :  { %497 = vmatpush3.bf16.msra.mxu0 %v365_v37 }
 0x1df   :  { %498 = vmatprep.subr.bf16.mxu0 %v544_v1 }
 0x1e2   :  { %499 = vmatpush3.bf16.msra.mxu0 %v366_v36 }
 0x1e5   :  { %501 = vmatmul.mubr.msk.bf16.vlgmr.msra.gmra.mrb[8].mxu0 %vm277_vm1, %v44_v38 }
 0x2b8   :  { %v409_v40 = vpop.f32.mrb[8].mxu0 }
 0x2b9   :  { %v410_v41 = vadd.f32 %v409_v40, %v370_v39  ;;  %v502_v42 = vpop.f32.mrb[9].mxu0 }
 0x2ba   :  { %v412_v43 = vpop.f32.mrb[10].mxu0 }
 0x2bb   :  { %v503_v44 = vpop.f32.mrb[11].mxu0  ;;  %416 = vst.msk [vmem:[#allocation2] sm:$0x3] %vm415_vm3, %v410_v41 }
 0x2bc   :  { %530 = shalt.err (!%p527_p4)
}
 0x2bd   :  { %s531_s29 = scalar_lea.hbm %s698_s7, 32 }
 0x2be   :  { %p532_p5 = scmp.ne.s32.totalorder %s698_s7, %s531_s29  ;;  %p535_p6 = scmp.lt.u32.totalorder %s531_s29, %s698_s7 }
 0x2c0   :  { %p537_p7 = pnand %p535_p6, %p532_p5 }
 0x2c2   :  { %540 = shalt.err (!%p537_p7)
}
 0x2c3   :  { %426 = dma.vmem_to_hbm [thread:$0]  %s424_s26, 32, %s698_s7, [#allocation3]  }
 0x2c4   :  { %541 = dma.done.wait [#allocation3], 32  }
 0x2c5   :  { %542 = vsyncadd [#allocation3], 4294967264 }
 0x2c6   :  { %430 = vsyncpa [#allocation3], 1 }

</bundles_post_ra>
